<compile_context>
chip_gen: v6e
topology: v6e:2x2x1
jax: 0.10.0
libtpu: 0.0.40
codegen_flags: <defaults>
</compile_context>

<pallas_src>
import functools

import jax
import jax.numpy as jnp
from jax import lax
from jax.experimental import pallas as pl
from jax.experimental.pallas import tpu as pltpu

_LANES = 128
_SUBLANES = 8
_TARGET_BLOCK_BYTES = 2 << 20      # per operand, per pipeline buffer
_MIN_ROW_TILE = 1024
_MAX_ROW_TILE = 8192               # 8192*128*4B = 4 MiB/operand/buffer cap


def _num_tensorcores():
    """Best-effort TensorCore count of the local chip (v5e/v6e: 1, v7x: 2)."""
    try:
        kind = jax.devices()[0].device_kind.lower()
    except Exception:
        return 1
    if "v7" in kind or "tpu7" in kind:
        return 2
    return 1


def _pick_row_tile(itemsize):
    rows = _TARGET_BLOCK_BYTES // (_LANES * itemsize)
    rows = (rows // _SUBLANES) * _SUBLANES
    return int(max(_MIN_ROW_TILE, min(_MAX_ROW_TILE, rows)))


def _dice_kernel(x_ref, t_ref, inter_out, sum_out, *, rows_total, blk_rows,
                 steps, n_blocks, mask_last, has_dup):
    c = pl.program_id(0)   # chunk (CORE_PARALLEL on multi-TC chips)
    i = pl.program_id(1)   # streaming step within the chunk (reduction axis)

    @pl.when(i == 0)
    def _():
        inter_out[...] = jnp.zeros_like(inter_out)
        sum_out[...] = jnp.zeros_like(sum_out)

    def fold(x, t):
        # Fold an (r, 128) block into the (8, 128) output accumulators with
        # pure vreg-wise VPU adds (no per-step cross-lane XLU reduction).
        xf = x.astype(jnp.float32)
        tf = t.astype(jnp.float32)
        prod = xf * tf
        ssum = xf + tf
        r = x.shape[0]
        r8 = (r // _SUBLANES) * _SUBLANES
        if r8:
            ph = prod if r8 == r else prod[:r8]
            sh = ssum if r8 == r else ssum[:r8]
            inter_out[...] += jnp.sum(ph.reshape(-1, _SUBLANES, _LANES), axis=0)
            sum_out[...] += jnp.sum(sh.reshape(-1, _SUBLANES, _LANES), axis=0)
        if r != r8:
            # <8 leftover rows: only reachable in the single-block (block ==
            # full array) case, so this sublane reduce runs at most once.
            inter_out[0:1, :] += jnp.sum(prod[r8:], axis=0, keepdims=True)
            sum_out[0:1, :] += jnp.sum(ssum[r8:], axis=0, keepdims=True)

    if mask_last or has_dup:
        block_id = c * steps + i
        last = n_blocks - 1

        @pl.when(block_id < last)
        def _():
            fold(x_ref[...], t_ref[...])

        @pl.when(block_id == last)
        def _():
            x = x_ref[...]
            t = t_ref[...]
            if mask_last:
                # Partial last block: rows past rows_total hold undefined VMEM
                # contents -> mask BEFORE any arithmetic (NaN/Inf safe).
                row_ids = (lax.broadcasted_iota(jnp.int32, x.shape, 0)
                           + last * blk_rows)
                valid = row_ids < rows_total
                x = jnp.where(valid, x, jnp.zeros_like(x))
                t = jnp.where(valid, t, jnp.zeros_like(t))
            fold(x, t)
        # block_id > last (clamped duplicate visit on a ragged chunk split):
        # both branches skipped -> contributes nothing.
    else:
        fold(x_ref[...], t_ref[...])


def dice_loss(inputs, targets, smooth=1.0):
    """Pallas TPU implementation of DiceLoss.forward.  Returns a scalar f32."""
    x = jnp.reshape(inputs, (-1,))
    t = jnp.reshape(targets, (-1,))
    n = x.shape[0]

    # No jnp.pad (it re-streams both operands through HBM).  The kernel
    # consumes the 128-aligned prefix; a <128-element ragged tail is reduced
    # directly in plain JAX.
    n_main = (n // _LANES) * _LANES
    tail_inter = jnp.float32(0.0)
    tail_total = jnp.float32(0.0)
    if n_main != n:
        xt = x[n_main:].astype(jnp.float32)
        tt = t[n_main:].astype(jnp.float32)
        tail_inter = jnp.sum(xt * tt)
        tail_total = jnp.sum(xt) + jnp.sum(tt)
        x = x[:n_main]
        t = t[:n_main]

    if n_main == 0:
        intersection = tail_inter
        total = tail_total
    else:
        rows = n_main // _LANES
        x2 = x.reshape(rows, _LANES)
        t2 = t.reshape(rows, _LANES)

        itemsize = max(x2.dtype.itemsize, t2.dtype.itemsize)
        row_tile = _pick_row_tile(itemsize)
        if rows <= row_tile:
            # One block covering the whole array (block == array shape is a
            # legal TPU tiling); no masking needed.
            blk_rows, n_blocks = rows, 1
        else:
            blk_rows = row_tile
            n_blocks = pl.cdiv(rows, row_tile)

        # Split the chunk axis across TensorCores only where there is more
        # than one (v7x); on v5e/v6e it collapses to a single chunk so no
        # duplicated tail-block DMA and no always-on masking.
        n_cores = _num_tensorcores()
        n_chunks = min(n_cores, n_blocks)
        steps = pl.cdiv(n_blocks, n_chunks)
        has_dup = (n_chunks * steps) != n_blocks
        mask_last = (n_blocks * blk_rows) != rows
        last_block = n_blocks - 1

        if has_dup:
            # Clamp so every DMA window stays inside the array; the duplicate
            # visit is skipped inside the kernel.
            idx_map = lambda c, i: (jnp.minimum(c * steps + i, last_block), 0)
        else:
            idx_map = lambda c, i: (c * steps + i, 0)

        if n_chunks > 1:
            lead_sem = getattr(pltpu, "CORE_PARALLEL", "parallel")
        else:
            lead_sem = "arbitrary"

        # Explicit VMEM budget: 2 operands x 2 pipeline buffers x block bytes,
        # plus f32 compute temporaries (upcasts, product, sum) and headroom.
        in_block_bytes = blk_rows * _LANES * (x2.dtype.itemsize
                                              + t2.dtype.itemsize)
        f32_tmp_bytes = 6 * blk_rows * _LANES * 4
        vmem_limit = 2 * in_block_bytes + f32_tmp_bytes + (8 << 20)
        vmem_limit = int(min(max(vmem_limit, 16 << 20), 56 << 20))

        kernel = functools.partial(
            _dice_kernel, rows_total=rows, blk_rows=blk_rows, steps=steps,
            n_blocks=n_blocks, mask_last=mask_last, has_dup=has_dup)

        inter_parts, sum_parts = pl.pallas_call(
            kernel,
            out_shape=(
                jax.ShapeDtypeStruct((n_chunks, _SUBLANES, _LANES),
                                     jnp.float32),
                jax.ShapeDtypeStruct((n_chunks, _SUBLANES, _LANES),
                                     jnp.float32),
            ),
            grid_spec=pltpu.PrefetchScalarGridSpec(
                num_scalar_prefetch=0,
                grid=(n_chunks, steps),
                in_specs=[
                    pl.BlockSpec((blk_rows, _LANES), idx_map),
                    pl.BlockSpec((blk_rows, _LANES), idx_map),
                ],
                out_specs=[
                    pl.BlockSpec((None, _SUBLANES, _LANES),
                                 lambda c, i: (c, 0, 0)),
                    pl.BlockSpec((None, _SUBLANES, _LANES),
                                 lambda c, i: (c, 0, 0)),
                ],
            ),
            compiler_params=pltpu.CompilerParams(
                dimension_semantics=(lead_sem, "arbitrary"),
                vmem_limit_bytes=vmem_limit,
            ),
        )(x2, t2)

        intersection = jnp.sum(inter_parts) + tail_inter
        total = jnp.sum(sum_parts) + tail_total

    smooth = jnp.float32(smooth)
    dice = (2.0 * intersection + smooth) / (total + smooth)
    return 1.0 - dice


def dice_loss_ref(inputs, targets, smooth=1.0):
    x = jnp.reshape(inputs, (-1,)).astype(jnp.float32)
    t = jnp.reshape(targets, (-1,)).astype(jnp.float32)
    inter = jnp.sum(x * t)
    dice = (2.0 * inter + smooth) / (jnp.sum(x) + jnp.sum(t) + smooth)
    return 1.0 - dice


def _check(shape, k1, k2):
    inputs = jax.nn.sigmoid(jax.random.normal(k1, shape, dtype=jnp.float32))
    targets = (jax.random.uniform(k2, shape) > 0.5).astype(jnp.float32)
    got = jax.block_until_ready(dice_loss(inputs, targets, smooth=1.0))
    ref = jax.block_until_ready(dice_loss_ref(inputs, targets, smooth=1.0))
    assert jnp.allclose(got, ref, rtol=1e-4, atol=1e-5), (shape, got, ref)


if __name__ == "__main__":
    key = jax.random.PRNGKey(0)
    keys = jax.random.split(key, 6)

    # Small NCHW segmentation-style example: tile-aligned, single block.
    _check((2, 4, 16, 16), keys[0], keys[1])

    # Multi-block streaming path with a masked partial last block
    # (n = 540800 -> 4225 rows of 128 -> 2 blocks of 4096 rows).
    _check((2, 4, 260, 260), keys[2], keys[3])

    # Ragged size: <128-element tail reduced in plain JAX plus a
    # non-multiple-of-8 row remainder folded in-kernel (n = 2312).
    _check((2, 4, 17, 17), keys[4], keys[5])

    print("KERNEL_OK")
</pallas_src>

<mosaic_0001>
module attributes {stable_mosaic.version = 11 : i64} {
  func.func @_dice_kernel(%arg0: i32, %arg1: i32, %arg2: memref<16x128xf32, #tpu.memory_space<vmem>>, %arg3: memref<16x128xf32, #tpu.memory_space<vmem>>, %arg4: memref<1x8x128xf32, #tpu.memory_space<vmem>>, %arg5: memref<1x8x128xf32, #tpu.memory_space<vmem>>) attributes {dimension_semantics = [#tpu.dimension_semantics<arbitrary>, #tpu.dimension_semantics<arbitrary>], iteration_bounds = array<i64: 1, 1>, scalar_prefetch = 0 : i64, scratch_operands = 0 : i64, tpu.core_type = #tpu.core_type<tc>, window_params = [{transform_indices = @transform_0, window_bounds = array<i64: 16, 128>}, {transform_indices = @transform_1, window_bounds = array<i64: 16, 128>}, {transform_indices = @transform_2, window_bounds = array<i64: 1, 8, 128>}, {transform_indices = @transform_3, window_bounds = array<i64: 1, 8, 128>}]} {
    %c0_i32 = arith.constant 0 : i32
    %0 = arith.cmpi eq, %arg1, %c0_i32 : i32
    %1 = arith.extui %0 : i1 to i32
    %c0_i32_0 = arith.constant 0 : i32
    %2 = arith.cmpi ne, %1, %c0_i32_0 : i32
    scf.if %2 {
      %cst_17 = arith.constant 0.000000e+00 : f32
      %23 = vector.broadcast %cst_17 : f32 to vector<8x128xf32>
      %c0_18 = arith.constant 0 : index
      %c0_19 = arith.constant 0 : index
      %c0_20 = arith.constant 0 : index
      %24 = vector.load %arg4[%c0_18, %c0_19, %c0_20] : memref<1x8x128xf32, #tpu.memory_space<vmem>>, vector<1x8x128xf32>
      %25 = vector.shape_cast %24 : vector<1x8x128xf32> to vector<8x128xf32>
      %26 = vector.shape_cast %23 : vector<8x128xf32> to vector<1x8x128xf32>
      tpu.vector_store %arg4[%c0_18, %c0_19, %c0_20], %26 {strides = array<i32>} : memref<1x8x128xf32, #tpu.memory_space<vmem>>, vector<1x8x128xf32>,
      %cst_21 = arith.constant 0.000000e+00 : f32
      %27 = vector.broadcast %cst_21 : f32 to vector<8x128xf32>
      %c0_22 = arith.constant 0 : index
      %c0_23 = arith.constant 0 : index
      %c0_24 = arith.constant 0 : index
      %28 = vector.load %arg5[%c0_22, %c0_23, %c0_24] : memref<1x8x128xf32, #tpu.memory_space<vmem>>, vector<1x8x128xf32>
      %29 = vector.shape_cast %28 : vector<1x8x128xf32> to vector<8x128xf32>
      %30 = vector.shape_cast %27 : vector<8x128xf32> to vector<1x8x128xf32>
      tpu.vector_store %arg5[%c0_22, %c0_23, %c0_24], %30 {strides = array<i32>} : memref<1x8x128xf32, #tpu.memory_space<vmem>>, vector<1x8x128xf32>,
    } else {
    }
    %c0 = arith.constant 0 : index
    %c0_1 = arith.constant 0 : index
    %3 = vector.load %arg2[%c0, %c0_1] : memref<16x128xf32, #tpu.memory_space<vmem>>, vector<16x128xf32>
    %c0_2 = arith.constant 0 : index
    %c0_3 = arith.constant 0 : index
    %4 = vector.load %arg3[%c0_2, %c0_3] : memref<16x128xf32, #tpu.memory_space<vmem>>, vector<16x128xf32>
    %5 = arith.mulf %3, %4 : vector<16x128xf32>
    %6 = arith.addf %3, %4 : vector<16x128xf32>
    %c0_4 = arith.constant 0 : index
    %c0_5 = arith.constant 0 : index
    %c0_6 = arith.constant 0 : index
    %7 = vector.load %arg4[%c0_4, %c0_5, %c0_6] : memref<1x8x128xf32, #tpu.memory_space<vmem>>, vector<1x8x128xf32>
    %8 = vector.shape_cast %7 : vector<1x8x128xf32> to vector<8x128xf32>
    %9 = vector.shape_cast %5 : vector<16x128xf32> to vector<2x8x128xf32>
    %cst = arith.constant dense<0.000000e+00> : vector<8x128xf32>
    %10 = vector.multi_reduction <add>, %9, %cst [0] : vector<2x8x128xf32> to vector<8x128xf32>
    %11 = arith.addf %8, %10 : vector<8x128xf32>
    %c0_7 = arith.constant 0 : index
    %c0_8 = arith.constant 0 : index
    %c0_9 = arith.constant 0 : index
    %12 = vector.load %arg4[%c0_7, %c0_8, %c0_9] : memref<1x8x128xf32, #tpu.memory_space<vmem>>, vector<1x8x128xf32>
    %13 = vector.shape_cast %12 : vector<1x8x128xf32> to vector<8x128xf32>
    %14 = vector.shape_cast %11 : vector<8x128xf32> to vector<1x8x128xf32>
    tpu.vector_store %arg4[%c0_7, %c0_8, %c0_9], %14 {strides = array<i32>} : memref<1x8x128xf32, #tpu.memory_space<vmem>>, vector<1x8x128xf32>,
    %c0_10 = arith.constant 0 : index
    %c0_11 = arith.constant 0 : index
    %c0_12 = arith.constant 0 : index
    %15 = vector.load %arg5[%c0_10, %c0_11, %c0_12] : memref<1x8x128xf32, #tpu.memory_space<vmem>>, vector<1x8x128xf32>
    %16 = vector.shape_cast %15 : vector<1x8x128xf32> to vector<8x128xf32>
    %17 = vector.shape_cast %6 : vector<16x128xf32> to vector<2x8x128xf32>
    %cst_13 = arith.constant dense<0.000000e+00> : vector<8x128xf32>
    %18 = vector.multi_reduction <add>, %17, %cst_13 [0] : vector<2x8x128xf32> to vector<8x128xf32>
    %19 = arith.addf %16, %18 : vector<8x128xf32>
    %c0_14 = arith.constant 0 : index
    %c0_15 = arith.constant 0 : index
    %c0_16 = arith.constant 0 : index
    %20 = vector.load %arg5[%c0_14, %c0_15, %c0_16] : memref<1x8x128xf32, #tpu.memory_space<vmem>>, vector<1x8x128xf32>
    %21 = vector.shape_cast %20 : vector<1x8x128xf32> to vector<8x128xf32>
    %22 = vector.shape_cast %19 : vector<8x128xf32> to vector<1x8x128xf32>
    tpu.vector_store %arg5[%c0_14, %c0_15, %c0_16], %22 {strides = array<i32>} : memref<1x8x128xf32, #tpu.memory_space<vmem>>, vector<1x8x128xf32>,
    return
  }
  func.func @transform_0(%arg0: i32, %arg1: i32) -> (i32, i32) {
    %c1_i32 = arith.constant 1 : i32
    %0 = arith.muli %arg0, %c1_i32 : i32
    %1 = arith.addi %0, %arg1 : i32
    %c0_i32 = arith.constant 0 : i32
    %c0_i32_0 = arith.constant 0 : i32
    return %1, %c0_i32 : i32, i32
  }
  func.func @transform_1(%arg0: i32, %arg1: i32) -> (i32, i32) {
    %c1_i32 = arith.constant 1 : i32
    %0 = arith.muli %arg0, %c1_i32 : i32
    %1 = arith.addi %0, %arg1 : i32
    %c0_i32 = arith.constant 0 : i32
    %c0_i32_0 = arith.constant 0 : i32
    return %1, %c0_i32 : i32, i32
  }
  func.func @transform_2(%arg0: i32, %arg1: i32) -> (i32, i32, i32) {
    %c0_i32 = arith.constant 0 : i32
    %c0_i32_0 = arith.constant 0 : i32
    %c0_i32_1 = arith.constant 0 : i32
    return %arg0, %c0_i32, %c0_i32_0 : i32, i32, i32
  }
  func.func @transform_3(%arg0: i32, %arg1: i32) -> (i32, i32, i32) {
    %c0_i32 = arith.constant 0 : i32
    %c0_i32_0 = arith.constant 0 : i32
    %c0_i32_1 = arith.constant 0 : i32
    return %arg0, %c0_i32, %c0_i32_0 : i32, i32, i32
  }
}

</mosaic_0001>

<bundles_post_ra>
// kernel: tpu_custom_call.1
= control target key start
LH: loop header
LB: loop body
LE: loop exit
PB: predicated region body
PF: predicated region fallthrough
CT: control target
= control target key end

     0   :  { %9 = vsyncpa [#allocation3], 0  ;;  %s240_s0 = inlined_call_operand.hbm [shape: f32[16,128], index: 0, kind: input, shape index: {}]   ;;  %s241_s1 = inlined_call_operand.hbm [shape: f32[16,128], index: 1, kind: input, shape index: {}]   ;;  %s242_s2 = inlined_call_operand.hbm [shape: f32[1,8,128], index: 2, kind: output, shape index: {0}]   ;;  %s243_s3 = inlined_call_operand.hbm [shape: f32[1,8,128], index: 3, kind: output, shape index: {1}]  }
   0x1   :  { %10 = vsyncpa [#allocation6], 0 }
   0x2   :  { %11 = vsyncpa [#allocation4], 0 }
   0x3   :  { %12 = vsyncpa [#allocation9], 0  ;;  %s202_s12 = smov [#allocation2]  }
   0x4   :  { %s22_s13 = sshll.u32 %s202_s12, 4  ;;  %s23_s13 = int_to_ptr.vmem [resolvable:$true] %s22_s13 }
   0x5   :  { %s122_s14 = scalar_lea.vmem %s23_s13, 256  ;;  %p127_p1 = scmp.lt.s32.totalorder %s23_s13, %s23_s13 }
   0x6   :  { %p123_p0 = scmp.ne.s32.totalorder %s23_s13, %s122_s14  ;;  %p128_p2 = scmp.lt.s32.totalorder %s122_s14, %s122_s14 }
   0x8   :  { %p129_p3 = por %p128_p2, %p127_p1 }
   0xa   :  { %p130_p4 = pnand %p129_p3, %p123_p0 }
   0xc   :  { %133 = shalt.err (!%p130_p4)
}
   0xd   :  { %s203_s15 = smov 128   ;;  %s204_s16 = smov 8  }
   0xe   :  { %28 = dma.hbm_to_vmem [thread:$0]  %s240_s0, 256, %s23_s13, [#allocation3], %s203_s15, %s203_s15, %s204_s16  }
   0xf   :  { %s205_s19 = smov [#allocation5]  }
  0x10   :  { %s38_s20 = sshll.u32 %s205_s19, 4  ;;  %s39_s20 = int_to_ptr.vmem [resolvable:$true] %s38_s20 }
  0x11   :  { %s142_s21 = scalar_lea.vmem %s39_s20, 256  ;;  %p147_p6 = scmp.lt.s32.totalorder %s39_s20, %s39_s20 }
  0x12   :  { %p143_p5 = scmp.ne.s32.totalorder %s39_s20, %s142_s21  ;;  %p148_p7 = scmp.lt.s32.totalorder %s142_s21, %s142_s21 }
  0x14   :  { %p149_p8 = por %p148_p7, %p147_p6 }
  0x16   :  { %p150_p9 = pnand %p149_p8, %p143_p5 }
  0x18   :  { %153 = shalt.err (!%p150_p9)
}
  0x19   :  { %44 = dma.hbm_to_vmem [thread:$0]  %s241_s1, 256, %s39_s20, [#allocation6], %s203_s15, %s203_s15, %s204_s16  }
  0x1a   :  { %194 = dma.done.wait [#allocation3], 256  }
  0x1b   :  { %195 = vsyncadd [#allocation3], 4294967040 }
  0x1c   :  { %196 = dma.done.wait [#allocation6], 256  }
  0x1d   :  { %197 = vsyncadd [#allocation6], 4294967040  ;;  %v61_v0 = vld [vmem:[#allocation2] sm:$0xff]  ;;  %v62_v1 = vld [vmem:[#allocation2 + $0x8] sm:$0xff]  ;;  %s206_s0 = smov [#allocation7]   ;;  %s207_s25 = smov [#allocation8]  }
  0x1e   :  { %v63_v2 = vld [vmem:[#allocation5] sm:$0xff]  ;;  %v64_v3 = vld [vmem:[#allocation5 + $0x8] sm:$0xff]  ;;  %s83_s24 = sshll.u32 %s206_s0, 4  ;;  %s93_s26 = sshll.u32 %s207_s25, 4  ;;  %s84_s24 = int_to_ptr.vmem [resolvable:$true] %s83_s24  ;;  %s94_s26 = int_to_ptr.vmem [resolvable:$true] %s93_s26 }
  0x1f   :  { %v65_v4 = vmul.f32 %v63_v2, %v61_v0  ;;  %v67_v5 = vadd.f32 %v63_v2, %v61_v0  ;;  %v66_v6 = vmul.f32 %v64_v3, %v62_v1  ;;  %v68_v7 = vadd.f32 %v64_v3, %v62_v1  ;;  %s154_s1 = scalar_lea.vmem %s84_s24, 128  ;;  %p159_p11 = scmp.lt.s32.totalorder %s84_s24, %s84_s24 }
  0x20   :  { %p155_p10 = scmp.ne.s32.totalorder %s84_s24, %s154_s1  ;;  %p160_p12 = scmp.lt.s32.totalorder %s154_s1, %s154_s1 }
  0x21   :  { %v70_v8 = vadd.f32 %v66_v6, %v65_v4  ;;  %v74_v9 = vadd.f32 %v68_v7, %v67_v5 }
  0x22   :  { %p161_p13 = por %p160_p12, %p159_p11 }
  0x23   :  { %72 = vst [vmem:[#allocation7] sm:$0xff] %v70_v8  ;;  %76 = vst [vmem:[#allocation8] sm:$0xff] %v74_v9 }
  0x24   :  { %p162_p0 = pnand %p161_p13, %p155_p10 }
  0x26   :  { %165 = shalt.err (!%p162_p0)
}
  0x27   :  { %86 = dma.vmem_to_hbm [thread:$0]  %s84_s24, 128, %s242_s2, [#allocation4]  }
  0x28   :  { %s174_s29 = scalar_lea.vmem %s94_s26, 128  ;;  %p179_p2 = scmp.lt.s32.totalorder %s94_s26, %s94_s26 }
  0x29   :  { %p175_p1 = scmp.ne.s32.totalorder %s94_s26, %s174_s29  ;;  %p180_p3 = scmp.lt.s32.totalorder %s174_s29, %s174_s29 }
  0x2b   :  { %p181_p4 = por %p180_p3, %p179_p2 }
  0x2d   :  { %p182_p5 = pnand %p181_p4, %p175_p1 }
  0x2f   :  { %185 = shalt.err (!%p182_p5)
}
  0x30   :  { %96 = dma.vmem_to_hbm [thread:$0]  %s94_s26, 128, %s243_s3, [#allocation9]  }
  0x31   :  { %198 = dma.done.wait [#allocation4], 128  }
  0x32   :  { %199 = vsyncadd [#allocation4], 4294967168 }
  0x33   :  { %200 = dma.done.wait [#allocation9], 128  }
  0x34   :  { %201 = vsyncadd [#allocation9], 4294967168 }
  0x35   :  { %103 = vsyncpa [#allocation3], 1 }
  0x36   :  { %104 = vsyncpa [#allocation6], 1 }
  0x37   :  { %105 = vsyncpa [#allocation4], 1 }
  0x38   :  { %106 = vsyncpa [#allocation9], 1 }

</bundles_post_ra>
